<compile_context>
chip_gen: v6e
topology: v6e:2x2x1
jax: 0.10.0
libtpu: 0.0.40
codegen_flags: <defaults>
</compile_context>

<pallas_src>
import jax
import jax.numpy as jnp
from jax.experimental import pallas as pl
from jax.experimental.pallas import tpu as pltpu

NUM_LABELS = 18          # torch.linspace(0, max_depth, 18)
NUM_ACC = 3              # independent accumulator pairs (EUP interleave)
GAMMA = 0.05             # charb(gamma) robust-distance parameter
LOGIT_SCALE = -10.0      # logits = -10 * energies


def _crf_depth_kernel(labels_ref, inv_step_ref, disp_ref, out_ref):
    """Per-pixel label energies -> softmax expectation.

    labels_ref:   (18,) f32 in SMEM  (scalar-prefetched depth labels)
    inv_step_ref: (1,)  f32 in SMEM  (17 / max_depth, or 0 if max_depth == 0)
    disp_ref:     (TR, Wc) f32 VMEM tile of the (flattened) upsampled disparity
    out_ref:      (TR, Wc) f32 VMEM tile of expected depth
    """
    d = disp_ref[...]                                        # (TR, Wc)
    inv_step = inv_step_ref[0]
    step = labels_ref[1]                                     # == max_depth / 17

    # Analytic softmax shift: the nearest label minimizes the Charbonnier
    # energy, hence gives the exact per-pixel max logit.  One extra sqrt
    # replaces an 18-way cross-sublane max and keeps exp() from under/overflow.
    idx = jnp.clip(jnp.floor(d * inv_step + 0.5), 0.0, float(NUM_LABELS - 1))
    dmin = d - idx * step
    m = LOGIT_SCALE * jnp.sqrt(dmin * dmin + GAMMA * GAMMA)  # per-pixel max logit

    # TODO(synk): CRFasRNN mean-field filtering (guide image / confidence /
    # niters / r / eps) has no source in the reference snippet; the filtered
    # logits are the unary logits passed through unchanged here.

    zeros = jnp.zeros_like(d)
    nums = [zeros for _ in range(NUM_ACC)]
    dens = [zeros for _ in range(NUM_ACC)]

    # Fully unrolled label loop, round-robin across NUM_ACC accumulator pairs
    # so the exp/sqrt chains of neighbouring labels are independent and can
    # be interleaved on the EUP.
    for l in range(NUM_LABELS):
        g = l % NUM_ACC
        lab = labels_ref[l]                                  # static SMEM read
        diff = d - lab
        e = jnp.sqrt(diff * diff + GAMMA * GAMMA)            # charb(gamma)
        p = jnp.exp(LOGIT_SCALE * e - m)                     # <= 1, no overflow
        dens[g] = dens[g] + p
        if l > 0:                                            # label 0 adds nothing to num
            nums[g] = nums[g] + p * lab

    num = (nums[0] + nums[1]) + nums[2]
    den = (dens[0] + dens[1]) + dens[2]

    # denom >= 1 (nearest label contributes exp(0)); approx reciprocal is safe.
    out_ref[...] = num * pl.reciprocal(den, approx=True)


def crf_depth_upsampler(disp_lowres, img_highres, vgg_features=None, *,
                        lane_width=1024, target_block_px=1 << 17):
    """JAX/Pallas equivalent of CRFdepthUpsampler.forward.

    disp_lowres:  [B, 1, h, w]   low-res disparity / depth
    img_highres:  [B, 3, H, W]   guide image (only its spatial size is used by
                                 the parts of the module that are defined)
    vgg_features: unused by the reference forward (consumed by the CRF only)
    returns:      [B, 1, H, W]   expected depth map
    """
    del vgg_features  # only consumed inside the (unavailable) CRFasRNN
    B, _, H, W = img_highres.shape

    # F.upsample(disp, (H, W), mode='bilinear')
    # TODO(synk): fuse the resize + global max into a first Pallas pass (or do
    # the 4-tap bilinear in-kernel) to drop ~12 B/pixel of HBM traffic; kept
    # in plain JAX to preserve jax.image.resize border semantics exactly.
    up = jax.image.resize(
        disp_lowres.astype(jnp.float32), (B, 1, H, W), method="bilinear")

    # labels = torch.linspace(0, upsampled_disp.max(), 18)
    max_depth = jnp.max(up)
    step = max_depth / jnp.float32(NUM_LABELS - 1)
    labels = step * jnp.arange(NUM_LABELS, dtype=jnp.float32)         # (18,)
    inv_step = jnp.where(
        max_depth > 0,
        jnp.float32(NUM_LABELS - 1) / jnp.maximum(max_depth, jnp.float32(1e-30)),
        jnp.float32(0.0),
    ).reshape(1).astype(jnp.float32)                                  # (1,)

    # confidence = (upsampled_disp > 0.01) is only consumed by the CRF step
    # (see TODO in the kernel), so it is not materialized here.

    # ---- Lane-dense pixel slab, independent of the image width ------------
    N = B * H * W
    flat = up.reshape(N)
    Wc = None
    for cand in (lane_width, 512, 256, 128):
        if N % cand == 0:
            Wc = cand
            break
    if Wc is None:
        Wc = lane_width                 # pad a small ragged tail (< Wc px)
    R = pl.cdiv(N, Wc)
    Np = R * Wc
    if Np != N:
        flat = jnp.pad(flat, (0, Np - N))
    slab = flat.reshape(R, Wc)

    # ---- Row-tile sizing ---------------------------------------------------
    # Big blocks amortize the ~0.35us/step grid overhead; but keep >= ~8
    # blocks on large inputs so v7x's two TensorCores both get work.
    tr = max(8, (target_block_px // Wc) // 8 * 8)
    if R >= 64:
        tr = min(tr, max(8, (pl.cdiv(R, 8) // 8) * 8))
    if tr >= R:
        tr = R                          # full-extent block is always legal
    grid = pl.cdiv(R, tr)

    out2d = pl.pallas_call(
        _crf_depth_kernel,
        out_shape=jax.ShapeDtypeStruct((R, Wc), jnp.float32),
        grid_spec=pltpu.PrefetchScalarGridSpec(
            num_scalar_prefetch=2,
            grid=(grid,),
            in_specs=[
                pl.BlockSpec((tr, Wc), lambda i, lab_ref, inv_ref: (i, 0)),
            ],
            out_specs=pl.BlockSpec((tr, Wc), lambda i, lab_ref, inv_ref: (i, 0)),
        ),
        compiler_params=pltpu.CompilerParams(
            dimension_semantics=("parallel",),
            vmem_limit_bytes=32 * 1024 * 1024),
    )(labels, inv_step, slab)

    return out2d.reshape(Np)[:N].reshape(B, 1, H, W)


if __name__ == "__main__":
    key = jax.random.PRNGKey(0)
    k1, k2, k3 = jax.random.split(key, 3)

    B, H, W = 2, 16, 16
    h, w = H // 2, W // 2
    d_in = 64  # module default d_in

    disp_lowres = jax.random.uniform(k1, (B, 1, h, w), jnp.float32, 0.0, 5.0)
    img_highres = jax.random.uniform(k2, (B, 3, H, W), jnp.float32)
    vgg_features = jax.random.normal(k3, (B, d_in, h, w), jnp.float32)

    out = crf_depth_upsampler(disp_lowres, img_highres, vgg_features)
    out = jax.block_until_ready(out)

    assert out.shape == (B, 1, H, W), out.shape
    assert bool(jnp.all(jnp.isfinite(out)))

    # Pure-JAX reference of the implemented forward path (unary softmax
    # expectation of the depth labels).
    up = jax.image.resize(
        disp_lowres.astype(jnp.float32), (B, 1, H, W), method="bilinear")
    max_depth = jnp.max(up)
    labels = (max_depth / (NUM_LABELS - 1)) * jnp.arange(
        NUM_LABELS, dtype=jnp.float32)
    lab4 = labels.reshape(1, NUM_LABELS, 1, 1)
    logits = LOGIT_SCALE * jnp.sqrt((up - lab4) ** 2 + GAMMA * GAMMA)
    probs = jax.nn.softmax(logits, axis=1)
    ref = jnp.sum(probs * lab4, axis=1, keepdims=True)
    err = float(jnp.max(jnp.abs(out - ref)))
    assert err < 2e-2, f"max abs error vs reference: {err}"

    print("KERNEL_OK")
</pallas_src>

<mosaic_0001>
module attributes {stable_mosaic.version = 11 : i64} {
  func.func @_crf_depth_kernel(%arg0: i32, %arg1: memref<18xf32, #tpu.memory_space<smem>>, %arg2: memref<1xf32, #tpu.memory_space<smem>>, %arg3: memref<1x512xf32, #tpu.memory_space<vmem>>, %arg4: memref<1x512xf32, #tpu.memory_space<vmem>>) attributes {dimension_semantics = [#tpu.dimension_semantics<parallel>], iteration_bounds = array<i64: 1>, scalar_prefetch = 2 : i64, scratch_operands = 0 : i64, tpu.core_type = #tpu.core_type<tc>, window_params = [{transform_indices = @transform_0, window_bounds = array<i64: 1, 512>}, {transform_indices = @transform_1, window_bounds = array<i64: 1, 512>}]} {
    %c0 = arith.constant 0 : index
    %c0_0 = arith.constant 0 : index
    %0 = vector.load %arg3[%c0, %c0_0] : memref<1x512xf32, #tpu.memory_space<vmem>>, vector<1x512xf32>
    %c0_1 = arith.constant 0 : index
    %1 = memref.load %arg2[%c0_1] : memref<1xf32, #tpu.memory_space<smem>>
    %c1 = arith.constant 1 : index
    %2 = memref.load %arg1[%c1] : memref<18xf32, #tpu.memory_space<smem>>
    %3 = vector.broadcast %1 : f32 to vector<1x512xf32>
    %4 = arith.mulf %0, %3 : vector<1x512xf32>
    %cst = arith.constant 5.000000e-01 : f32
    %5 = vector.broadcast %cst : f32 to vector<1x512xf32>
    %6 = arith.addf %4, %5 : vector<1x512xf32>
    %7 = math.floor %6 : vector<1x512xf32>
    %cst_2 = arith.constant 0.000000e+00 : f32
    %cst_3 = arith.constant 1.700000e+01 : f32
    %8 = vector.broadcast %cst_2 : f32 to vector<1x512xf32>
    %9 = arith.maximumf %8, %7 : vector<1x512xf32>
    %10 = vector.broadcast %cst_3 : f32 to vector<1x512xf32>
    %11 = arith.minimumf %10, %9 : vector<1x512xf32>
    %12 = vector.broadcast %2 : f32 to vector<1x512xf32>
    %13 = arith.mulf %11, %12 : vector<1x512xf32>
    %14 = arith.subf %0, %13 : vector<1x512xf32>
    %15 = arith.mulf %14, %14 : vector<1x512xf32>
    %cst_4 = arith.constant 2.500000e-03 : f32
    %16 = vector.broadcast %cst_4 : f32 to vector<1x512xf32>
    %17 = arith.addf %15, %16 : vector<1x512xf32>
    %18 = math.sqrt %17 : vector<1x512xf32>
    %cst_5 = arith.constant -1.000000e+01 : f32
    %19 = vector.broadcast %cst_5 : f32 to vector<1x512xf32>
    %20 = arith.mulf %19, %18 : vector<1x512xf32>
    %cst_6 = arith.constant 0.000000e+00 : f32
    %21 = vector.broadcast %cst_6 : f32 to vector<1x512xf32>
    %c0_7 = arith.constant 0 : index
    %22 = memref.load %arg1[%c0_7] : memref<18xf32, #tpu.memory_space<smem>>
    %23 = vector.broadcast %22 : f32 to vector<1x512xf32>
    %24 = arith.subf %0, %23 : vector<1x512xf32>
    %25 = arith.mulf %24, %24 : vector<1x512xf32>
    %cst_8 = arith.constant 2.500000e-03 : f32
    %26 = vector.broadcast %cst_8 : f32 to vector<1x512xf32>
    %27 = arith.addf %25, %26 : vector<1x512xf32>
    %28 = math.sqrt %27 : vector<1x512xf32>
    %cst_9 = arith.constant -1.000000e+01 : f32
    %29 = vector.broadcast %cst_9 : f32 to vector<1x512xf32>
    %30 = arith.mulf %29, %28 : vector<1x512xf32>
    %31 = arith.subf %30, %20 : vector<1x512xf32>
    %32 = math.exp %31 : vector<1x512xf32>
    %33 = arith.addf %21, %32 : vector<1x512xf32>
    %c1_10 = arith.constant 1 : index
    %34 = memref.load %arg1[%c1_10] : memref<18xf32, #tpu.memory_space<smem>>
    %35 = vector.broadcast %34 : f32 to vector<1x512xf32>
    %36 = arith.subf %0, %35 : vector<1x512xf32>
    %37 = arith.mulf %36, %36 : vector<1x512xf32>
    %cst_11 = arith.constant 2.500000e-03 : f32
    %38 = vector.broadcast %cst_11 : f32 to vector<1x512xf32>
    %39 = arith.addf %37, %38 : vector<1x512xf32>
    %40 = math.sqrt %39 : vector<1x512xf32>
    %cst_12 = arith.constant -1.000000e+01 : f32
    %41 = vector.broadcast %cst_12 : f32 to vector<1x512xf32>
    %42 = arith.mulf %41, %40 : vector<1x512xf32>
    %43 = arith.subf %42, %20 : vector<1x512xf32>
    %44 = math.exp %43 : vector<1x512xf32>
    %45 = arith.addf %21, %44 : vector<1x512xf32>
    %46 = vector.broadcast %34 : f32 to vector<1x512xf32>
    %47 = arith.mulf %44, %46 : vector<1x512xf32>
    %48 = arith.addf %21, %47 : vector<1x512xf32>
    %c2 = arith.constant 2 : index
    %49 = memref.load %arg1[%c2] : memref<18xf32, #tpu.memory_space<smem>>
    %50 = vector.broadcast %49 : f32 to vector<1x512xf32>
    %51 = arith.subf %0, %50 : vector<1x512xf32>
    %52 = arith.mulf %51, %51 : vector<1x512xf32>
    %cst_13 = arith.constant 2.500000e-03 : f32
    %53 = vector.broadcast %cst_13 : f32 to vector<1x512xf32>
    %54 = arith.addf %52, %53 : vector<1x512xf32>
    %55 = math.sqrt %54 : vector<1x512xf32>
    %cst_14 = arith.constant -1.000000e+01 : f32
    %56 = vector.broadcast %cst_14 : f32 to vector<1x512xf32>
    %57 = arith.mulf %56, %55 : vector<1x512xf32>
    %58 = arith.subf %57, %20 : vector<1x512xf32>
    %59 = math.exp %58 : vector<1x512xf32>
    %60 = arith.addf %21, %59 : vector<1x512xf32>
    %61 = vector.broadcast %49 : f32 to vector<1x512xf32>
    %62 = arith.mulf %59, %61 : vector<1x512xf32>
    %63 = arith.addf %21, %62 : vector<1x512xf32>
    %c3 = arith.constant 3 : index
    %64 = memref.load %arg1[%c3] : memref<18xf32, #tpu.memory_space<smem>>
    %65 = vector.broadcast %64 : f32 to vector<1x512xf32>
    %66 = arith.subf %0, %65 : vector<1x512xf32>
    %67 = arith.mulf %66, %66 : vector<1x512xf32>
    %cst_15 = arith.constant 2.500000e-03 : f32
    %68 = vector.broadcast %cst_15 : f32 to vector<1x512xf32>
    %69 = arith.addf %67, %68 : vector<1x512xf32>
    %70 = math.sqrt %69 : vector<1x512xf32>
    %cst_16 = arith.constant -1.000000e+01 : f32
    %71 = vector.broadcast %cst_16 : f32 to vector<1x512xf32>
    %72 = arith.mulf %71, %70 : vector<1x512xf32>
    %73 = arith.subf %72, %20 : vector<1x512xf32>
    %74 = math.exp %73 : vector<1x512xf32>
    %75 = arith.addf %33, %74 : vector<1x512xf32>
    %76 = vector.broadcast %64 : f32 to vector<1x512xf32>
    %77 = arith.mulf %74, %76 : vector<1x512xf32>
    %78 = arith.addf %21, %77 : vector<1x512xf32>
    %c4 = arith.constant 4 : index
    %79 = memref.load %arg1[%c4] : memref<18xf32, #tpu.memory_space<smem>>
    %80 = vector.broadcast %79 : f32 to vector<1x512xf32>
    %81 = arith.subf %0, %80 : vector<1x512xf32>
    %82 = arith.mulf %81, %81 : vector<1x512xf32>
    %cst_17 = arith.constant 2.500000e-03 : f32
    %83 = vector.broadcast %cst_17 : f32 to vector<1x512xf32>
    %84 = arith.addf %82, %83 : vector<1x512xf32>
    %85 = math.sqrt %84 : vector<1x512xf32>
    %cst_18 = arith.constant -1.000000e+01 : f32
    %86 = vector.broadcast %cst_18 : f32 to vector<1x512xf32>
    %87 = arith.mulf %86, %85 : vector<1x512xf32>
    %88 = arith.subf %87, %20 : vector<1x512xf32>
    %89 = math.exp %88 : vector<1x512xf32>
    %90 = arith.addf %45, %89 : vector<1x512xf32>
    %91 = vector.broadcast %79 : f32 to vector<1x512xf32>
    %92 = arith.mulf %89, %91 : vector<1x512xf32>
    %93 = arith.addf %48, %92 : vector<1x512xf32>
    %c5 = arith.constant 5 : index
    %94 = memref.load %arg1[%c5] : memref<18xf32, #tpu.memory_space<smem>>
    %95 = vector.broadcast %94 : f32 to vector<1x512xf32>
    %96 = arith.subf %0, %95 : vector<1x512xf32>
    %97 = arith.mulf %96, %96 : vector<1x512xf32>
    %cst_19 = arith.constant 2.500000e-03 : f32
    %98 = vector.broadcast %cst_19 : f32 to vector<1x512xf32>
    %99 = arith.addf %97, %98 : vector<1x512xf32>
    %100 = math.sqrt %99 : vector<1x512xf32>
    %cst_20 = arith.constant -1.000000e+01 : f32
    %101 = vector.broadcast %cst_20 : f32 to vector<1x512xf32>
    %102 = arith.mulf %101, %100 : vector<1x512xf32>
    %103 = arith.subf %102, %20 : vector<1x512xf32>
    %104 = math.exp %103 : vector<1x512xf32>
    %105 = arith.addf %60, %104 : vector<1x512xf32>
    %106 = vector.broadcast %94 : f32 to vector<1x512xf32>
    %107 = arith.mulf %104, %106 : vector<1x512xf32>
    %108 = arith.addf %63, %107 : vector<1x512xf32>
    %c6 = arith.constant 6 : index
    %109 = memref.load %arg1[%c6] : memref<18xf32, #tpu.memory_space<smem>>
    %110 = vector.broadcast %109 : f32 to vector<1x512xf32>
    %111 = arith.subf %0, %110 : vector<1x512xf32>
    %112 = arith.mulf %111, %111 : vector<1x512xf32>
    %cst_21 = arith.constant 2.500000e-03 : f32
    %113 = vector.broadcast %cst_21 : f32 to vector<1x512xf32>
    %114 = arith.addf %112, %113 : vector<1x512xf32>
    %115 = math.sqrt %114 : vector<1x512xf32>
    %cst_22 = arith.constant -1.000000e+01 : f32
    %116 = vector.broadcast %cst_22 : f32 to vector<1x512xf32>
    %117 = arith.mulf %116, %115 : vector<1x512xf32>
    %118 = arith.subf %117, %20 : vector<1x512xf32>
    %119 = math.exp %118 : vector<1x512xf32>
    %120 = arith.addf %75, %119 : vector<1x512xf32>
    %121 = vector.broadcast %109 : f32 to vector<1x512xf32>
    %122 = arith.mulf %119, %121 : vector<1x512xf32>
    %123 = arith.addf %78, %122 : vector<1x512xf32>
    %c7 = arith.constant 7 : index
    %124 = memref.load %arg1[%c7] : memref<18xf32, #tpu.memory_space<smem>>
    %125 = vector.broadcast %124 : f32 to vector<1x512xf32>
    %126 = arith.subf %0, %125 : vector<1x512xf32>
    %127 = arith.mulf %126, %126 : vector<1x512xf32>
    %cst_23 = arith.constant 2.500000e-03 : f32
    %128 = vector.broadcast %cst_23 : f32 to vector<1x512xf32>
    %129 = arith.addf %127, %128 : vector<1x512xf32>
    %130 = math.sqrt %129 : vector<1x512xf32>
    %cst_24 = arith.constant -1.000000e+01 : f32
    %131 = vector.broadcast %cst_24 : f32 to vector<1x512xf32>
    %132 = arith.mulf %131, %130 : vector<1x512xf32>
    %133 = arith.subf %132, %20 : vector<1x512xf32>
    %134 = math.exp %133 : vector<1x512xf32>
    %135 = arith.addf %90, %134 : vector<1x512xf32>
    %136 = vector.broadcast %124 : f32 to vector<1x512xf32>
    %137 = arith.mulf %134, %136 : vector<1x512xf32>
    %138 = arith.addf %93, %137 : vector<1x512xf32>
    %c8 = arith.constant 8 : index
    %139 = memref.load %arg1[%c8] : memref<18xf32, #tpu.memory_space<smem>>
    %140 = vector.broadcast %139 : f32 to vector<1x512xf32>
    %141 = arith.subf %0, %140 : vector<1x512xf32>
    %142 = arith.mulf %141, %141 : vector<1x512xf32>
    %cst_25 = arith.constant 2.500000e-03 : f32
    %143 = vector.broadcast %cst_25 : f32 to vector<1x512xf32>
    %144 = arith.addf %142, %143 : vector<1x512xf32>
    %145 = math.sqrt %144 : vector<1x512xf32>
    %cst_26 = arith.constant -1.000000e+01 : f32
    %146 = vector.broadcast %cst_26 : f32 to vector<1x512xf32>
    %147 = arith.mulf %146, %145 : vector<1x512xf32>
    %148 = arith.subf %147, %20 : vector<1x512xf32>
    %149 = math.exp %148 : vector<1x512xf32>
    %150 = arith.addf %105, %149 : vector<1x512xf32>
    %151 = vector.broadcast %139 : f32 to vector<1x512xf32>
    %152 = arith.mulf %149, %151 : vector<1x512xf32>
    %153 = arith.addf %108, %152 : vector<1x512xf32>
    %c9 = arith.constant 9 : index
    %154 = memref.load %arg1[%c9] : memref<18xf32, #tpu.memory_space<smem>>
    %155 = vector.broadcast %154 : f32 to vector<1x512xf32>
    %156 = arith.subf %0, %155 : vector<1x512xf32>
    %157 = arith.mulf %156, %156 : vector<1x512xf32>
    %cst_27 = arith.constant 2.500000e-03 : f32
    %158 = vector.broadcast %cst_27 : f32 to vector<1x512xf32>
    %159 = arith.addf %157, %158 : vector<1x512xf32>
    %160 = math.sqrt %159 : vector<1x512xf32>
    %cst_28 = arith.constant -1.000000e+01 : f32
    %161 = vector.broadcast %cst_28 : f32 to vector<1x512xf32>
    %162 = arith.mulf %161, %160 : vector<1x512xf32>
    %163 = arith.subf %162, %20 : vector<1x512xf32>
    %164 = math.exp %163 : vector<1x512xf32>
    %165 = arith.addf %120, %164 : vector<1x512xf32>
    %166 = vector.broadcast %154 : f32 to vector<1x512xf32>
    %167 = arith.mulf %164, %166 : vector<1x512xf32>
    %168 = arith.addf %123, %167 : vector<1x512xf32>
    %c10 = arith.constant 10 : index
    %169 = memref.load %arg1[%c10] : memref<18xf32, #tpu.memory_space<smem>>
    %170 = vector.broadcast %169 : f32 to vector<1x512xf32>
    %171 = arith.subf %0, %170 : vector<1x512xf32>
    %172 = arith.mulf %171, %171 : vector<1x512xf32>
    %cst_29 = arith.constant 2.500000e-03 : f32
    %173 = vector.broadcast %cst_29 : f32 to vector<1x512xf32>
    %174 = arith.addf %172, %173 : vector<1x512xf32>
    %175 = math.sqrt %174 : vector<1x512xf32>
    %cst_30 = arith.constant -1.000000e+01 : f32
    %176 = vector.broadcast %cst_30 : f32 to vector<1x512xf32>
    %177 = arith.mulf %176, %175 : vector<1x512xf32>
    %178 = arith.subf %177, %20 : vector<1x512xf32>
    %179 = math.exp %178 : vector<1x512xf32>
    %180 = arith.addf %135, %179 : vector<1x512xf32>
    %181 = vector.broadcast %169 : f32 to vector<1x512xf32>
    %182 = arith.mulf %179, %181 : vector<1x512xf32>
    %183 = arith.addf %138, %182 : vector<1x512xf32>
    %c11 = arith.constant 11 : index
    %184 = memref.load %arg1[%c11] : memref<18xf32, #tpu.memory_space<smem>>
    %185 = vector.broadcast %184 : f32 to vector<1x512xf32>
    %186 = arith.subf %0, %185 : vector<1x512xf32>
    %187 = arith.mulf %186, %186 : vector<1x512xf32>
    %cst_31 = arith.constant 2.500000e-03 : f32
    %188 = vector.broadcast %cst_31 : f32 to vector<1x512xf32>
    %189 = arith.addf %187, %188 : vector<1x512xf32>
    %190 = math.sqrt %189 : vector<1x512xf32>
    %cst_32 = arith.constant -1.000000e+01 : f32
    %191 = vector.broadcast %cst_32 : f32 to vector<1x512xf32>
    %192 = arith.mulf %191, %190 : vector<1x512xf32>
    %193 = arith.subf %192, %20 : vector<1x512xf32>
    %194 = math.exp %193 : vector<1x512xf32>
    %195 = arith.addf %150, %194 : vector<1x512xf32>
    %196 = vector.broadcast %184 : f32 to vector<1x512xf32>
    %197 = arith.mulf %194, %196 : vector<1x512xf32>
    %198 = arith.addf %153, %197 : vector<1x512xf32>
    %c12 = arith.constant 12 : index
    %199 = memref.load %arg1[%c12] : memref<18xf32, #tpu.memory_space<smem>>
    %200 = vector.broadcast %199 : f32 to vector<1x512xf32>
    %201 = arith.subf %0, %200 : vector<1x512xf32>
    %202 = arith.mulf %201, %201 : vector<1x512xf32>
    %cst_33 = arith.constant 2.500000e-03 : f32
    %203 = vector.broadcast %cst_33 : f32 to vector<1x512xf32>
    %204 = arith.addf %202, %203 : vector<1x512xf32>
    %205 = math.sqrt %204 : vector<1x512xf32>
    %cst_34 = arith.constant -1.000000e+01 : f32
    %206 = vector.broadcast %cst_34 : f32 to vector<1x512xf32>
    %207 = arith.mulf %206, %205 : vector<1x512xf32>
    %208 = arith.subf %207, %20 : vector<1x512xf32>
    %209 = math.exp %208 : vector<1x512xf32>
    %210 = arith.addf %165, %209 : vector<1x512xf32>
    %211 = vector.broadcast %199 : f32 to vector<1x512xf32>
    %212 = arith.mulf %209, %211 : vector<1x512xf32>
    %213 = arith.addf %168, %212 : vector<1x512xf32>
    %c13 = arith.constant 13 : index
    %214 = memref.load %arg1[%c13] : memref<18xf32, #tpu.memory_space<smem>>
    %215 = vector.broadcast %214 : f32 to vector<1x512xf32>
    %216 = arith.subf %0, %215 : vector<1x512xf32>
    %217 = arith.mulf %216, %216 : vector<1x512xf32>
    %cst_35 = arith.constant 2.500000e-03 : f32
    %218 = vector.broadcast %cst_35 : f32 to vector<1x512xf32>
    %219 = arith.addf %217, %218 : vector<1x512xf32>
    %220 = math.sqrt %219 : vector<1x512xf32>
    %cst_36 = arith.constant -1.000000e+01 : f32
    %221 = vector.broadcast %cst_36 : f32 to vector<1x512xf32>
    %222 = arith.mulf %221, %220 : vector<1x512xf32>
    %223 = arith.subf %222, %20 : vector<1x512xf32>
    %224 = math.exp %223 : vector<1x512xf32>
    %225 = arith.addf %180, %224 : vector<1x512xf32>
    %226 = vector.broadcast %214 : f32 to vector<1x512xf32>
    %227 = arith.mulf %224, %226 : vector<1x512xf32>
    %228 = arith.addf %183, %227 : vector<1x512xf32>
    %c14 = arith.constant 14 : index
    %229 = memref.load %arg1[%c14] : memref<18xf32, #tpu.memory_space<smem>>
    %230 = vector.broadcast %229 : f32 to vector<1x512xf32>
    %231 = arith.subf %0, %230 : vector<1x512xf32>
    %232 = arith.mulf %231, %231 : vector<1x512xf32>
    %cst_37 = arith.constant 2.500000e-03 : f32
    %233 = vector.broadcast %cst_37 : f32 to vector<1x512xf32>
    %234 = arith.addf %232, %233 : vector<1x512xf32>
    %235 = math.sqrt %234 : vector<1x512xf32>
    %cst_38 = arith.constant -1.000000e+01 : f32
    %236 = vector.broadcast %cst_38 : f32 to vector<1x512xf32>
    %237 = arith.mulf %236, %235 : vector<1x512xf32>
    %238 = arith.subf %237, %20 : vector<1x512xf32>
    %239 = math.exp %238 : vector<1x512xf32>
    %240 = arith.addf %195, %239 : vector<1x512xf32>
    %241 = vector.broadcast %229 : f32 to vector<1x512xf32>
    %242 = arith.mulf %239, %241 : vector<1x512xf32>
    %243 = arith.addf %198, %242 : vector<1x512xf32>
    %c15 = arith.constant 15 : index
    %244 = memref.load %arg1[%c15] : memref<18xf32, #tpu.memory_space<smem>>
    %245 = vector.broadcast %244 : f32 to vector<1x512xf32>
    %246 = arith.subf %0, %245 : vector<1x512xf32>
    %247 = arith.mulf %246, %246 : vector<1x512xf32>
    %cst_39 = arith.constant 2.500000e-03 : f32
    %248 = vector.broadcast %cst_39 : f32 to vector<1x512xf32>
    %249 = arith.addf %247, %248 : vector<1x512xf32>
    %250 = math.sqrt %249 : vector<1x512xf32>
    %cst_40 = arith.constant -1.000000e+01 : f32
    %251 = vector.broadcast %cst_40 : f32 to vector<1x512xf32>
    %252 = arith.mulf %251, %250 : vector<1x512xf32>
    %253 = arith.subf %252, %20 : vector<1x512xf32>
    %254 = math.exp %253 : vector<1x512xf32>
    %255 = arith.addf %210, %254 : vector<1x512xf32>
    %256 = vector.broadcast %244 : f32 to vector<1x512xf32>
    %257 = arith.mulf %254, %256 : vector<1x512xf32>
    %258 = arith.addf %213, %257 : vector<1x512xf32>
    %c16 = arith.constant 16 : index
    %259 = memref.load %arg1[%c16] : memref<18xf32, #tpu.memory_space<smem>>
    %260 = vector.broadcast %259 : f32 to vector<1x512xf32>
    %261 = arith.subf %0, %260 : vector<1x512xf32>
    %262 = arith.mulf %261, %261 : vector<1x512xf32>
    %cst_41 = arith.constant 2.500000e-03 : f32
    %263 = vector.broadcast %cst_41 : f32 to vector<1x512xf32>
    %264 = arith.addf %262, %263 : vector<1x512xf32>
    %265 = math.sqrt %264 : vector<1x512xf32>
    %cst_42 = arith.constant -1.000000e+01 : f32
    %266 = vector.broadcast %cst_42 : f32 to vector<1x512xf32>
    %267 = arith.mulf %266, %265 : vector<1x512xf32>
    %268 = arith.subf %267, %20 : vector<1x512xf32>
    %269 = math.exp %268 : vector<1x512xf32>
    %270 = arith.addf %225, %269 : vector<1x512xf32>
    %271 = vector.broadcast %259 : f32 to vector<1x512xf32>
    %272 = arith.mulf %269, %271 : vector<1x512xf32>
    %273 = arith.addf %228, %272 : vector<1x512xf32>
    %c17 = arith.constant 17 : index
    %274 = memref.load %arg1[%c17] : memref<18xf32, #tpu.memory_space<smem>>
    %275 = vector.broadcast %274 : f32 to vector<1x512xf32>
    %276 = arith.subf %0, %275 : vector<1x512xf32>
    %277 = arith.mulf %276, %276 : vector<1x512xf32>
    %cst_43 = arith.constant 2.500000e-03 : f32
    %278 = vector.broadcast %cst_43 : f32 to vector<1x512xf32>
    %279 = arith.addf %277, %278 : vector<1x512xf32>
    %280 = math.sqrt %279 : vector<1x512xf32>
    %cst_44 = arith.constant -1.000000e+01 : f32
    %281 = vector.broadcast %cst_44 : f32 to vector<1x512xf32>
    %282 = arith.mulf %281, %280 : vector<1x512xf32>
    %283 = arith.subf %282, %20 : vector<1x512xf32>
    %284 = math.exp %283 : vector<1x512xf32>
    %285 = arith.addf %240, %284 : vector<1x512xf32>
    %286 = vector.broadcast %274 : f32 to vector<1x512xf32>
    %287 = arith.mulf %284, %286 : vector<1x512xf32>
    %288 = arith.addf %243, %287 : vector<1x512xf32>
    %289 = arith.addf %258, %273 : vector<1x512xf32>
    %290 = arith.addf %289, %288 : vector<1x512xf32>
    %291 = arith.addf %255, %270 : vector<1x512xf32>
    %292 = arith.addf %291, %285 : vector<1x512xf32>
    %293 = tpu.reciprocal %292 {approx = true} : vector<1x512xf32> -> vector<1x512xf32>
    %294 = arith.mulf %290, %293 : vector<1x512xf32>
    %c0_45 = arith.constant 0 : index
    %c0_46 = arith.constant 0 : index
    %295 = vector.load %arg4[%c0_45, %c0_46] : memref<1x512xf32, #tpu.memory_space<vmem>>, vector<1x512xf32>
    tpu.vector_store %arg4[%c0_45, %c0_46], %294 {strides = array<i32>} : memref<1x512xf32, #tpu.memory_space<vmem>>, vector<1x512xf32>,
    return
  }
  func.func @transform_0(%arg0: i32, %arg1: memref<18xf32, #tpu.memory_space<smem>>, %arg2: memref<1xf32, #tpu.memory_space<smem>>) -> (i32, i32) {
    %c0_i32 = arith.constant 0 : i32
    %c0_i32_0 = arith.constant 0 : i32
    return %arg0, %c0_i32 : i32, i32
  }
  func.func @transform_1(%arg0: i32, %arg1: memref<18xf32, #tpu.memory_space<smem>>, %arg2: memref<1xf32, #tpu.memory_space<smem>>) -> (i32, i32) {
    %c0_i32 = arith.constant 0 : i32
    %c0_i32_0 = arith.constant 0 : i32
    return %arg0, %c0_i32 : i32, i32
  }
}

</mosaic_0001>

<bundles_post_ra>
// kernel: tpu_custom_call.1
= control target key start
LH: loop header
LB: loop body
LE: loop exit
PB: predicated region body
PF: predicated region fallthrough
CT: control target
= control target key end

     0   :  { %s984_s0 = inlined_call_operand.vmem [shape: f32[18], index: 0, kind: input, shape index: {}]   ;;  %s985_s1 = inlined_call_operand.<no memory space> [shape: f32[1], index: 1, kind: input, shape index: {}]   ;;  %s986_s2 = inlined_call_operand.hbm [shape: f32[1,512], index: 2, kind: input, shape index: {}]   ;;  %s987_s3 = inlined_call_operand.hbm [shape: f32[1,512], index: 3, kind: output, shape index: {}]  }
   0x1   :  { %s8_s14 = sshll.u32 %s984_s0, 4  ;;  %s9_s14 = int_to_ptr.vmem [resolvable:$true] %s8_s14 }
   0x2   :  { %s512_s15 = scalar_lea.vmem %s9_s14, 16  ;;  %p517_p1 = scmp.lt.s32.totalorder %s9_s14, %s9_s14 }
   0x3   :  { %p513_p0 = scmp.ne.s32.totalorder %s9_s14, %s512_s15  ;;  %p518_p2 = scmp.lt.s32.totalorder %s512_s15, %s512_s15 }
   0x5   :  { %p519_p3 = por %p518_p2, %p517_p1 }
   0x7   :  { %p520_p4 = pnand %p519_p3, %p513_p0 }
   0x9   :  { %523 = shalt.err (!%p520_p4)  }
   0xa   :  { %s570_s16 = smov [#allocation3]  }
   0xb   :  { %11 = dma.vmem_to_smem %s9_s14, 16, %s570_s16, [#allocation2] }
   0xc   :  { %564 = dma.done.wait [#allocation2], 16 }
   0xd   :  { %565 = vsyncadd [#allocation2], 4294967280 }
   0xe   :  { %14 = sfence }
   0xf   :  { %15 = vsyncpa [#allocation6], 0 }
  0x10   :  { %16 = vsyncpa [#allocation7], 0  ;;  %s571_s17 = smov [#allocation5]  }
  0x11   :  { %s23_s18 = sshll.u32 %s571_s17, 4  ;;  %s24_s18 = int_to_ptr.vmem [resolvable:$true] %s23_s18 }
  0x12   :  { %s532_s19 = scalar_lea.vmem %s24_s18, 64  ;;  %p537_p6 = scmp.lt.s32.totalorder %s24_s18, %s24_s18 }
  0x13   :  { %p533_p5 = scmp.ne.s32.totalorder %s24_s18, %s532_s19  ;;  %p538_p7 = scmp.lt.s32.totalorder %s532_s19, %s532_s19 }
  0x15   :  { %p539_p8 = por %p538_p7, %p537_p6 }
  0x17   :  { %p540_p9 = pnand %p539_p8, %p533_p5 }
  0x19   :  { %543 = shalt.err (!%p540_p9)
}
  0x1a   :  { %26 = dma.hbm_to_vmem [thread:$0]  %s986_s2, 64, %s24_s18, [#allocation6]  }
  0x1b   :  { %566 = dma.done.wait [#allocation6], 64  }
  0x1c   :  { %567 = vsyncadd [#allocation6], 4294967232  ;;  %s52_s21 = sld [smem:[#allocation3]]  ;;  %v33_v0 = vstv %s985_s1  ;;  %v604_v1 = vld [vmem:[#allocation5] sm:$0xf]  ;;  %s572_s12 = smov [#allocation8]  }
  0x1d   :  { %s416_s22 = sld [smem:[#allocation3 + $0x1]]  ;;  %v34_v2 = vmul.f32 %v33_v0, %v604_v1  ;;  %s407_s13 = sshll.u32 %s572_s12, 4  ;;  %s408_s13 = int_to_ptr.vmem [resolvable:$true] %s407_s13 }
  0x1e   :  { %s602_s25 = sld [smem:[#allocation3 + $0x2]]  ;;  %s544_s14 = scalar_lea.vmem %s408_s13, 64 }
  0x1f   :  { %s606_s26 = sld [smem:[#allocation3 + $0x3]]  ;;  %v35_v3 = vadd.f32 0.5, %v34_v2  ;;  %p545_p10 = scmp.ne.s32.totalorder %s408_s13, %s544_s14 }
  0x20   :  { %s609_s2 = sld [smem:[#allocation3 + $0x4]]  ;;  %p549_p11 = scmp.lt.s32.totalorder %s408_s13, %s408_s13 }
  0x21   :  { %s611_s27 = sld [smem:[#allocation3 + $0x5]]  ;;  %v36_v6 = vfloor.f32 %v35_v3  ;;  %p550_p12 = scmp.lt.s32.totalorder %s544_s14, %s544_s14 }
  0x22   :  { %v53_v4 = vstv %s52_s21  ;;  %s613_s1 = sld [smem:[#allocation3 + $0x6]] }
  0x23   :  { %v615_v5 = vstv %s416_s22  ;;  %v54_v8 = vsub.f32 %v604_v1, %v53_v4  ;;  %v37_v10 = vmax.f32 %v36_v6, 0.0  ;;  %s626_s28 = sld [smem:[#allocation3 + $0x7]]  ;;  %p551_p13 = por %p550_p12, %p549_p11 }
  0x24   :  { %v69_v7 = vsub.f32 %v604_v1, %v615_v5  ;;  %v87_v9 = vstv %s602_s25  ;;  %s643_s29 = sld [smem:[#allocation3 + $0x8]] }
  0x25   :  { %v106_v11 = vstv %s606_s26  ;;  %v38_v12 = vmin.f32 %v37_v10, 17.0  ;;  %v88_v14 = vsub.f32 %v604_v1, %v87_v9  ;;  %v55_v16 = vmul.f32 %v54_v8, %v54_v8  ;;  %s650_s30 = sld [smem:[#allocation3 + $0x9]]  ;;  %p552_p0 = pnand %p551_p13, %p545_p10 }
  0x26   :  { %v70_v13 = vmul.f32 %v69_v7, %v69_v7  ;;  %v125_v15 = vstv %s609_s2  ;;  %v107_v19 = vsub.f32 %v604_v1, %v106_v11  ;;  %s659_s4 = sld [smem:[#allocation3 + $0xa]] }
  0x27   :  { %v144_v17 = vstv %s611_s27  ;;  %v40_v18 = vmul.f32 %v615_v5, %v38_v12  ;;  %v126_v21 = vsub.f32 %v604_v1, %v125_v15  ;;  %v89_v24 = vmul.f32 %v88_v14, %v88_v14  ;;  %s668_s5 = sld [smem:[#allocation3 + $0xb]] }
  0x28   :  { %v163_v20 = vstv %s613_s1  ;;  %v638_v23 = vadd.f32 0.0025, %v70_v13  ;;  %v145_v25 = vsub.f32 %v604_v1, %v144_v17  ;;  %v645_v26 = vadd.f32 0.0025, %v55_v16  ;;  %s692_s6 = sld [smem:[#allocation3 + $0xc]] }
  0x29   :  { %v41_v22 = vsub.f32 %v604_v1, %v40_v18  ;;  %v164_v27 = vsub.f32 %v604_v1, %v163_v20  ;;  %v108_v29 = vmul.f32 %v107_v19, %v107_v19  ;;  %v127_v30 = vmul.f32 %v126_v21, %v126_v21  ;;  %s713_s7 = sld [smem:[#allocation3 + $0xd]] }
  0x2a   :  { %436 = vrsqrt.f32 %v638_v23  ;;  %v653_v31 = vadd.f32 0.0025, %v89_v24  ;;  %v146_v32 = vmul.f32 %v145_v25, %v145_v25  ;;  %v182_v33 = vstv %s626_s28  ;;  %s743_s8 = sld [smem:[#allocation3 + $0xe]] }
  0x2b   :  { %v42_v28 = vmul.f32 %v41_v22, %v41_v22  ;;  %438 = vrsqrt.f32 %v645_v26  ;;  %v165_v35 = vmul.f32 %v164_v27, %v164_v27  ;;  %v661_v36 = vadd.f32 0.0025, %v108_v29  ;;  %s752_s9 = sld [smem:[#allocation3 + $0xf]] }
  0x2c   :  { %v663_v37 = vadd.f32 0.0025, %v127_v30  ;;  %v183_v38 = vsub.f32 %v604_v1, %v182_v33  ;;  %440 = vrsqrt.f32 %v653_v31  ;;  %v671_v39 = vadd.f32 0.0025, %v146_v32  ;;  %s819_s10 = sld [smem:[#allocation3 + $0x10]] }
  0x2d   :  { %v656_v34 = vadd.f32 0.0025, %v42_v28  ;;  %v201_v40 = vstv %s643_s29  ;;  %v675_v41 = vadd.f32 0.0025, %v165_v35  ;;  %v220_v44 = vstv %s650_s30  ;;  %s827_s11 = sld [smem:[#allocation3 + $0x11]] }
  0x2e   :  { %v184_v42 = vmul.f32 %v183_v38, %v183_v38  ;;  %v202_v43 = vsub.f32 %v604_v1, %v201_v40  ;;  %v239_v45 = vstv %s659_s4  ;;  %v221_v46 = vsub.f32 %v604_v1, %v220_v44 }
  0x2f   :  { %442 = vrsqrt.f32 %v656_v34  ;;  %v258_v49 = vstv %s668_s5  ;;  %v240_v50 = vsub.f32 %v604_v1, %v239_v45  ;;  %vm59_vm0 = vcmp.eq.f32.partialorder %v645_v26, inf }
  0x30   :  { %444 = vrsqrt.f32 %v661_v36  ;;  %v689_v47 = vadd.f32 0.0025, %v184_v42  ;;  %v203_v48 = vmul.f32 %v202_v43, %v202_v43  ;;  %vm74_vm1 = vcmp.eq.f32.partialorder %v638_v23, inf }
  0x31   :  { %446 = vrsqrt.f32 %v663_v37  ;;  %vm76_vm2 = vcmp.eq.f32.partialorder %v638_v23, 0.0  ;;  %vm61_vm3 = vcmp.eq.f32.partialorder %v645_v26, 0.0  ;;  %v62_v53 = vand.u32 2147483648, %v645_v26 }
  0x32   :  { %448 = vrsqrt.f32 %v671_v39  ;;  %v222_v54 = vmul.f32 %v221_v46, %v221_v46  ;;  %v259_v55 = vsub.f32 %v604_v1, %v258_v49  ;;  %v77_v56 = vand.u32 2147483648, %v638_v23 }
  0x33   :  { %450 = vrsqrt.f32 %v675_v41  ;;  %vm93_vm4 = vcmp.eq.f32.partialorder %v653_v31, inf  ;;  %v708_v57 = vadd.f32 0.0025, %v203_v48  ;;  %vm95_vm5 = vcmp.eq.f32.partialorder %v653_v31, 0.0 }
  0x34   :  { %452 = vrsqrt.f32 %v689_v47  ;;  %v96_v59 = vand.u32 2147483648, %v653_v31  ;;  %v241_v60 = vmul.f32 %v240_v50, %v240_v50  ;;  %vm112_vm6 = vcmp.eq.f32.partialorder %v661_v36, inf }
  0x35   :  { %v115_v63 = vand.u32 2147483648, %v661_v36  ;;  %vm131_vm7 = vcmp.eq.f32.partialorder %v663_v37, inf  ;;  %vm114_vm8 = vcmp.eq.f32.partialorder %v661_v36, 0.0  ;;  %v134_v2 = vand.u32 2147483648, %v663_v37 }
  0x36   :  { %vm150_vm9 = vcmp.eq.f32.partialorder %v671_v39, inf  ;;  %v722_v3 = vadd.f32 0.0025, %v222_v54  ;;  %v260_v4 = vmul.f32 %v259_v55, %v259_v55  ;;  %vm46_vm10 = vcmp.eq.f32.partialorder %v656_v34, inf }
  0x37   :  { %v437_v51 = vpop.eup %436  ;;  %vm133_vm11 = vcmp.eq.f32.partialorder %v663_v37, 0.0  ;;  %v153_v7 = vand.u32 2147483648, %v671_v39  ;;  %454 = vrsqrt.f32 %v708_v57  ;;  %v277_v8 = vstv %s692_s6 }
  0x38   :  { %v439_v52 = vpop.eup %438  ;;  %v73_v58 = vmul.f32 %v437_v51, %v638_v23  ;;  %vm48_vm12 = vcmp.eq.f32.partialorder %v656_v34, 0.0  ;;  %vm152_vm13 = vcmp.eq.f32.partialorder %v671_v39, 0.0  ;;  %v735_v14 = vadd.f32 0.0025, %v241_v60 }
  0x39   :  { %v441_v61 = vpop.eup %440  ;;  %v58_v62 = vmul.f32 %v439_v52, %v645_v26  ;;  %v49_v19 = vand.u32 2147483648, %v656_v34  ;;  %vm169_vm14 = vcmp.eq.f32.partialorder %v675_v41, inf  ;;  %456 = vrsqrt.f32 %v722_v3 }
  0x3a   :  { %v75_v12 = vsel %vm74_vm1, %v638_v23, %v73_v58  ;;  %v92_v13 = vmul.f32 %v441_v61, %v653_v31  ;;  %v747_v25 = vadd.f32 0.0025, %v260_v4  ;;  %v278_v27 = vsub.f32 %v604_v1, %v277_v8 }
  0x3b   :  { %v60_v21 = vsel %vm59_vm0, %v645_v26, %v58_v62  ;;  %v78_v28 = vsel %vm76_vm2, %v77_v56, %v75_v12  ;;  %vm171_vm15 = vcmp.eq.f32.partialorder %v675_v41, 0.0  ;;  %v172_v30 = vand.u32 2147483648, %v675_v41 }
  0x3c   :  { %v443_v0 = vpop.eup %442  ;;  %v94_v32 = vsel %vm93_vm4, %v653_v31, %v92_v13  ;;  %458 = vrsqrt.f32 %v735_v14  ;;  %v296_v38 = vstv %s713_s7  ;;  %v63_v42 = vsel %vm61_vm3, %v62_v53, %v60_v21 }
  0x3d   :  { %v445_v6 = vpop.eup %444  ;;  %v45_v18 = vmul.f32 %v443_v0, %v656_v34  ;;  %vm188_vm0 = vcmp.eq.f32.partialorder %v689_v47, inf  ;;  %v191_v48 = vand.u32 2147483648, %v689_v47  ;;  %460 = vrsqrt.f32 %v747_v25 }
  0x3e   :  { %v447_v10 = vpop.eup %446  ;;  %v111_v24 = vmul.f32 %v445_v6, %v661_v36  ;;  %v279_v50 = vmul.f32 %v278_v27, %v278_v27  ;;  %v777_v51 = vmul.f32 -10.0, %v78_v28  ;;  %v97_v26 = vsel %vm95_vm5, %v96_v59, %v94_v32 }
  0x3f   :  { %v449_v16 = vpop.eup %448  ;;  %v130_v29 = vmul.f32 %v447_v10, %v663_v37  ;;  %v47_v23 = vsel %vm46_vm10, %v656_v34, %v45_v18  ;;  %vm190_vm1 = vcmp.eq.f32.partialorder %v689_v47, 0.0  ;;  %v297_v53 = vsub.f32 %v604_v1, %v296_v38 }
  0x40   :  { %v451_v22 = vpop.eup %450  ;;  %v149_v35 = vmul.f32 %v449_v16, %v671_v39  ;;  %v113_v46 = vsel %vm112_vm6, %v661_v36, %v111_v24  ;;  %v50_v55 = vsel %vm48_vm12, %v49_v19, %v47_v23  ;;  %v64_v56 = vmul.f32 -10.0, %v63_v42 }
  0x41   :  { %v168_v43 = vmul.f32 %v451_v22, %v675_v41  ;;  %v132_v52 = vsel %vm131_vm7, %v663_v37, %v130_v29  ;;  %v453_v54 = vpop.eup %452  ;;  %vm207_vm2 = vcmp.eq.f32.partialorder %v708_v57, inf  ;;  %v116_v58 = vsel %vm114_vm8, %v115_v63, %v113_v46 }
  0x42   :  { %v151_v31 = vsel %vm150_vm9, %v671_v39, %v149_v35  ;;  %v210_v60 = vand.u32 2147483648, %v708_v57  ;;  %v315_v61 = vstv %s743_s8  ;;  %v98_v34 = vmul.f32 -10.0, %v97_v26 }
  0x43   :  { %v170_v59 = vsel %vm169_vm14, %v675_v41, %v168_v43  ;;  %v135_v62 = vsel %vm133_vm11, %v134_v2, %v132_v52  ;;  %v803_v0 = vadd.f32 0.0025, %v279_v50  ;;  %v334_v4 = vstv %s752_s9 }
  0x44   :  { %v806_v6 = vmul.f32 -10.0, %v50_v55  ;;  %v154_v36 = vsel %vm152_vm13, %v153_v7, %v151_v31  ;;  %v187_v63 = vmul.f32 %v453_v54, %v689_v47  ;;  %vm209_vm3 = vcmp.eq.f32.partialorder %v708_v57, 0.0  ;;  %v455_v12 = vpop.eup %454 }
  0x45   :  { %vm226_vm4 = vcmp.eq.f32.partialorder %v722_v3, inf  ;;  %v298_v10 = vmul.f32 %v297_v53, %v297_v53  ;;  %v117_v13 = vmul.f32 -10.0, %v116_v58  ;;  %v173_v37 = vsel %vm171_vm15, %v172_v30, %v170_v59 }
  0x46   :  { %v229_v2 = vand.u32 2147483648, %v722_v3  ;;  %v316_v16 = vsub.f32 %v604_v1, %v315_v61  ;;  %v136_v39 = vmul.f32 -10.0, %v135_v62  ;;  %vm245_vm5 = vcmp.eq.f32.partialorder %v735_v14, inf  ;;  %v457_v22 = vpop.eup %456 }
  0x47   :  { %v822_v7 = vadd.f32 0.0025, %v298_v10  ;;  %v335_v18 = vsub.f32 %v604_v1, %v334_v4  ;;  %v155_v19 = vmul.f32 -10.0, %v154_v36  ;;  %vm228_vm6 = vcmp.eq.f32.partialorder %v722_v3, 0.0 }
  0x48   :  { %v248_v41 = vand.u32 2147483648, %v735_v14  ;;  %462 = vrsqrt.f32 %v803_v0  ;;  %v317_v21 = vmul.f32 %v316_v16, %v316_v16  ;;  %v65_v24 = vsub.f32 %v64_v56, %v806_v6 }
  0x49   :  { %v174_v27 = vmul.f32 -10.0, %v173_v37  ;;  %v189_v28 = vsel %vm188_vm0, %v689_v47, %v187_v63  ;;  %v206_v29 = vmul.f32 %v455_v12, %v708_v57  ;;  %v80_v30 = vsub.f32 %v777_v51, %v806_v6  ;;  %v459_v23 = vpop.eup %458 }
  0x4a   :  { %v99_v32 = vsub.f32 %v98_v34, %v806_v6  ;;  %vm247_vm7 = vcmp.eq.f32.partialorder %v735_v14, 0.0  ;;  %vm264_vm8 = vcmp.eq.f32.partialorder %v747_v25, inf  ;;  %v842_v35 = vadd.f32 0.0025, %v317_v21  ;;  %v461_v52 = vpop.eup %460 }
  0x4b   :  { %v118_v42 = vsub.f32 %v117_v13, %v806_v6  ;;  %v137_v43 = vsub.f32 %v136_v39, %v806_v6  ;;  %464 = vrsqrt.f32 %v822_v7  ;;  %v336_v46 = vmul.f32 %v335_v18, %v335_v18 }
  0x4c   :  { %v156_v50 = vsub.f32 %v155_v19, %v806_v6  ;;  %v192_v51 = vsel %vm190_vm1, %v191_v48, %v189_v28  ;;  %v225_v26 = vmul.f32 %v457_v22, %v722_v3  ;;  %vm266_vm9 = vcmp.eq.f32.partialorder %v747_v25, 0.0 }
  0x4d   :  { %466 = vrsqrt.f32 %v842_v35  ;;  %v66_v53 = vmul.f32 1.442695, %v65_v24  ;;  %v175_v54 = vsub.f32 %v174_v27, %v806_v6  ;;  %v208_v55 = vsel %vm207_vm2, %v708_v57, %v206_v29 }
  0x4e   :  { %v857_v56 = vadd.f32 0.0025, %v336_v46  ;;  %v81_v47 = vmul.f32 1.442695, %v80_v30  ;;  %v100_v48 = vmul.f32 1.442695, %v99_v32  ;;  %v244_v31 = vmul.f32 %v459_v23, %v735_v14 }
  0x4f   :  { %v353_v58 = vstv %s819_s10  ;;  %v119_v59 = vmul.f32 1.442695, %v118_v42  ;;  %v138_v34 = vmul.f32 1.442695, %v137_v43  ;;  %v193_v62 = vmul.f32 -10.0, %v192_v51 }
  0x50   :  { %v372_v36 = vstv %s827_s11  ;;  %v211_v63 = vsel %vm209_vm3, %v210_v60, %v208_v55  ;;  %v227_v10 = vsel %vm226_vm4, %v722_v3, %v225_v26  ;;  %v263_v12 = vmul.f32 %v461_v52, %v747_v25 }
  0x51   :  { %468 = vrsqrt.f32 %v857_v56  ;;  %v869_v13 = vmul.f32 1.442695, %v156_v50  ;;  %v176_v37 = vmul.f32 1.442695, %v175_v54  ;;  %v354_v16 = vsub.f32 %v604_v1, %v353_v58 }
  0x52   :  { %470 = vpow2.f32 %v66_v53  ;;  %v246_v57 = vsel %vm245_vm5, %v735_v14, %v244_v31  ;;  %v267_v60 = vand.u32 2147483648, %v747_v25  ;;  %v373_v39 = vsub.f32 %v604_v1, %v372_v36 }
  0x53   :  { %472 = vpow2.f32 %v81_v47  ;;  %v212_v18 = vmul.f32 -10.0, %v211_v63  ;;  %v230_v19 = vsel %vm228_vm6, %v229_v2, %v227_v10  ;;  %vm283_vm10 = vcmp.eq.f32.partialorder %v803_v0, inf }
  0x54   :  { %v355_v21 = vmul.f32 %v354_v16, %v354_v16  ;;  %474 = vpow2.f32 %v100_v48  ;;  %v194_v22 = vsub.f32 %v193_v62, %v806_v6  ;;  %v265_v24 = vsel %vm264_vm8, %v747_v25, %v263_v12 }
  0x55   :  { %v374_v27 = vmul.f32 %v373_v39, %v373_v39  ;;  %v463_v28 = vpop.eup %462  ;;  %476 = vpow2.f32 %v119_v59  ;;  %v249_v1 = vsel %vm247_vm7, %v248_v41, %v246_v57  ;;  %v286_v29 = vand.u32 2147483648, %v803_v0 }
  0x56   :  { %v891_v3 = vadd.f32 0.0025, %v355_v21  ;;  %478 = vpow2.f32 %v138_v34  ;;  %v231_v2 = vmul.f32 -10.0, %v230_v19  ;;  %v282_v30 = vmul.f32 %v463_v28, %v803_v0 }
  0x57   :  { %vm285_vm11 = vcmp.eq.f32.partialorder %v803_v0, 0.0  ;;  %v213_v32 = vsub.f32 %v212_v18, %v806_v6  ;;  %v268_v23 = vsel %vm266_vm9, %v267_v60, %v265_v24  ;;  %v899_v42 = vadd.f32 0.0025, %v374_v27 }
  0x58   :  { %480 = vrsqrt.f32 %v891_v3  ;;  %v465_v14 = vpop.eup %464  ;;  %v250_v41 = vmul.f32 -10.0, %v249_v1  ;;  %v284_v43 = vsel %vm283_vm10, %v803_v0, %v282_v30  ;;  %vm302_vm12 = vcmp.eq.f32.partialorder %v822_v7, inf }
  0x59   :  { %v305_v46 = vand.u32 2147483648, %v822_v7  ;;  %v287_v51 = vsel %vm285_vm11, %v286_v29, %v284_v43  ;;  %v301_v26 = vmul.f32 %v465_v14, %v822_v7  ;;  %vm304_vm13 = vcmp.eq.f32.partialorder %v822_v7, 0.0 }
  0x5a   :  { %v467_v50 = vpop.eup %466  ;;  %vm321_vm14 = vcmp.eq.f32.partialorder %v842_v35, inf  ;;  %v232_v25 = vsub.f32 %v231_v2, %v806_v6  ;;  %v269_v52 = vmul.f32 -10.0, %v268_v23  ;;  %v324_v54 = vand.u32 2147483648, %v842_v35 }
  0x5b   :  { %v320_v53 = vmul.f32 %v467_v50, %v842_v35  ;;  %v288_v0 = vmul.f32 -10.0, %v287_v51  ;;  %v303_v55 = vsel %vm302_vm12, %v822_v7, %v301_v26  ;;  %vm323_vm15 = vcmp.eq.f32.partialorder %v842_v35, 0.0 }
  0x5c   :  { %482 = vrsqrt.f32 %v899_v42  ;;  %v195_v47 = vmul.f32 1.442695, %v194_v22  ;;  %v251_v48 = vsub.f32 %v250_v41, %v806_v6  ;;  %v306_v31 = vsel %vm304_vm13, %v305_v46, %v303_v55 }
  0x5d   :  { %v322_v59 = vsel %vm321_vm14, %v842_v35, %v320_v53  ;;  %v214_v62 = vmul.f32 1.442695, %v213_v32  ;;  %v307_v63 = vmul.f32 -10.0, %v306_v31  ;;  %vm340_vm0 = vcmp.eq.f32.partialorder %v857_v56, inf }
  0x5e   :  { %v469_v34 = vpop.eup %468  ;;  %v343_v10 = vand.u32 2147483648, %v857_v56  ;;  %v270_v7 = vsub.f32 %v269_v52, %v806_v6  ;;  %v325_v16 = vsel %vm323_vm15, %v324_v54, %v322_v59  ;;  %vm342_vm1 = vcmp.eq.f32.partialorder %v857_v56, 0.0 }
  0x5f   :  { %v471_v12 = vpop.eup %470  ;;  %v339_v57 = vmul.f32 %v469_v34, %v857_v56  ;;  %484 = vpow2.f32 %v176_v37  ;;  %v233_v39 = vmul.f32 1.442695, %v232_v25  ;;  %v289_v35 = vsub.f32 %v288_v0, %v806_v6 }
  0x60   :  { %v922_v60 = vpop.eup %472  ;;  %486 = vpow2.f32 %v869_v13  ;;  %v252_v18 = vmul.f32 1.442695, %v251_v48  ;;  %v308_v22 = vsub.f32 %v307_v63, %v806_v6  ;;  %v326_v24 = vmul.f32 -10.0, %v325_v16 }
  0x61   :  { %v341_v19 = vsel %vm340_vm0, %v857_v56, %v339_v57  ;;  %v927_v21 = vpop.eup %474  ;;  %488 = vpow2.f32 %v195_v47  ;;  %v271_v1 = vmul.f32 1.442695, %v270_v7  ;;  %v290_v2 = vmul.f32 1.442695, %v289_v35 }
  0x62   :  { %v344_v27 = vsel %vm342_vm1, %v343_v10, %v341_v19  ;;  %v477_v28 = vpop.eup %476  ;;  %490 = vpow2.f32 %v214_v62  ;;  %vm359_vm2 = vcmp.eq.f32.partialorder %v891_v3, inf  ;;  %v362_v56 = vand.u32 2147483648, %v891_v3 }
  0x63   :  { %v345_v29 = vmul.f32 -10.0, %v344_v27  ;;  %v479_v37 = vpop.eup %478  ;;  %492 = vpow2.f32 %v233_v39  ;;  %v309_v32 = vmul.f32 1.442695, %v308_v22  ;;  %v327_v23 = vsub.f32 %v326_v24, %v806_v6 }
  0x64   :  { %494 = vpow2.f32 %v252_v18  ;;  %vm361_vm3 = vcmp.eq.f32.partialorder %v891_v3, 0.0  ;;  %vm378_vm4 = vcmp.eq.f32.partialorder %v899_v42, inf  ;;  %vm380_vm5 = vcmp.eq.f32.partialorder %v899_v42, 0.0 }
  0x65   :  { %v481_v30 = vpop.eup %480  ;;  %v346_v13 = vsub.f32 %v345_v29, %v806_v6  ;;  %496 = vpow2.f32 %v271_v1  ;;  %v381_v51 = vand.u32 2147483648, %v899_v42  ;;  %v328_v26 = vmul.f32 1.442695, %v327_v23 }
  0x66   :  { %v358_v14 = vmul.f32 %v481_v30, %v891_v3  ;;  %498 = vpow2.f32 %v290_v2  ;;  %v121_v53 = vadd.f32 %v477_v28, %v471_v12  ;;  %v140_v48 = vadd.f32 %v479_v37, %v922_v60 }
  0x67   :  { %v347_v41 = vmul.f32 1.442695, %v346_v13  ;;  %500 = vpow2.f32 %v309_v32  ;;  %v84_v35 = vmul.f32 %v922_v60, %v615_v5  ;;  %v141_v18 = vmul.f32 %v479_v37, %v125_v15 }
  0x68   :  { %v360_v43 = vsel %vm359_vm2, %v891_v3, %v358_v14  ;;  %v103_v1 = vmul.f32 %v927_v21, %v87_v9  ;;  %v122_v29 = vmul.f32 %v477_v28, %v106_v11 }
  0x69   :  { %v483_v46 = vpop.eup %482  ;;  %v363_v50 = vsel %vm361_vm3, %v362_v56, %v360_v43  ;;  %502 = vpow2.f32 %v347_v41  ;;  %v142_v60 = vadd.f32 %v141_v18, %v84_v35 }
  0x6a   :  { %v364_v25 = vmul.f32 -10.0, %v363_v50  ;;  %v377_v52 = vmul.f32 %v483_v46, %v899_v42  ;;  %504 = vpow2.f32 %v328_v26 }
  0x6c   :  { %v365_v54 = vsub.f32 %v364_v25, %v806_v6  ;;  %v379_v0 = vsel %vm378_vm4, %v899_v42, %v377_v52  ;;  %v485_v3 = vpop.eup %484 }
  0x6d   :  { %v382_v55 = vsel %vm380_vm5, %v381_v51, %v379_v0  ;;  %v487_v47 = vpop.eup %486  ;;  %v178_v63 = vadd.f32 %v485_v3, %v121_v53  ;;  %v179_v5 = vmul.f32 %v485_v3, %v163_v20 }
  0x6e   :  { %v366_v31 = vmul.f32 1.442695, %v365_v54  ;;  %v383_v59 = vmul.f32 -10.0, %v382_v55  ;;  %v489_v34 = vpop.eup %488  ;;  %v159_v7 = vadd.f32 %v487_v47, %v927_v21  ;;  %v160_v2 = vmul.f32 %v487_v47, %v144_v17 }
  0x6f   :  { %v491_v62 = vpop.eup %490  ;;  %v197_v16 = vadd.f32 %v489_v34, %v140_v48  ;;  %v198_v15 = vmul.f32 %v489_v34, %v182_v33  ;;  %v180_v9 = vadd.f32 %v179_v5, %v122_v29  ;;  %v396_v34 = vlaneseq }
  0x70   :  { %506 = vpow2.f32 %v366_v31  ;;  %v384_v10 = vsub.f32 %v383_v59, %v806_v6  ;;  %v493_v12 = vpop.eup %492  ;;  %v216_v6 = vadd.f32 %v491_v62, %v159_v7  ;;  %v161_v23 = vadd.f32 %v160_v2, %v103_v1 }
  0x71   :  { %v495_v42 = vpop.eup %494  ;;  %v235_v19 = vadd.f32 %v493_v12, %v178_v63  ;;  %v217_v21 = vmul.f32 %v491_v62, %v201_v40  ;;  %v236_v11 = vmul.f32 %v493_v12, %v220_v44  ;;  %v199_v17 = vadd.f32 %v198_v15, %v142_v60 }
  0x72   :  { %v385_v57 = vmul.f32 1.442695, %v384_v10  ;;  %v497_v39 = vpop.eup %496  ;;  %v254_v24 = vadd.f32 %v495_v42, %v197_v16  ;;  %v255_v20 = vmul.f32 %v495_v42, %v239_v45  ;;  %vm398_vm6 = vcmp.lt.s32.totalorder %v396_v34, 512 }
  0x73   :  { %v499_v22 = vpop.eup %498  ;;  %v273_v13 = vadd.f32 %v497_v39, %v216_v6  ;;  %v218_v43 = vadd.f32 %v217_v21, %v161_v23  ;;  %v237_v46 = vadd.f32 %v236_v11, %v180_v9  ;;  %v274_v50 = vmul.f32 %v497_v39, %v258_v49 }
  0x74   :  { %508 = vpow2.f32 %v385_v57  ;;  %v501_v27 = vpop.eup %500  ;;  %v292_v37 = vadd.f32 %v499_v22, %v235_v19  ;;  %v293_v51 = vmul.f32 %v499_v22, %v277_v8  ;;  %v256_v26 = vadd.f32 %v255_v20, %v199_v17 }
  0x75   :  { %v311_v56 = vadd.f32 %v501_v27, %v254_v24  ;;  %v312_v40 = vmul.f32 %v501_v27, %v296_v38  ;;  %v275_v52 = vadd.f32 %v274_v50, %v218_v43 }
  0x76   :  { %v503_v30 = vpop.eup %502  ;;  %v294_v53 = vadd.f32 %v293_v51, %v237_v46 }
  0x77   :  { %v505_v32 = vpop.eup %504  ;;  %v349_v28 = vadd.f32 %v503_v30, %v292_v37  ;;  %v313_v0 = vadd.f32 %v312_v40, %v256_v26  ;;  %v350_v3 = vmul.f32 %v503_v30, %v334_v4 }
  0x78   :  { %v330_v14 = vadd.f32 %v505_v32, %v273_v13  ;;  %v331_v54 = vmul.f32 %v505_v32, %v315_v61 }
  0x79   :  { %v351_v8 = vadd.f32 %v350_v3, %v294_v53 }
  0x7a   :  { %v332_v49 = vadd.f32 %v331_v54, %v275_v52 }
  0x7d   :  { %v507_v33 = vpop.eup %506 }
  0x7e   :  { %v368_v41 = vadd.f32 %v507_v33, %v311_v56  ;;  %v369_v55 = vmul.f32 %v507_v33, %v353_v58 }
  0x80   :  { %v392_v44 = vadd.f32 %v368_v41, %v349_v28  ;;  %v370_v48 = vadd.f32 %v369_v55, %v313_v0 }
  0x81   :  { %v509_v25 = vpop.eup %508 }
  0x82   :  { %v387_v45 = vadd.f32 %v509_v25, %v330_v14  ;;  %v388_v31 = vmul.f32 %v509_v25, %v372_v36  ;;  %v390_v59 = vadd.f32 %v370_v48, %v351_v8 }
  0x84   :  { %v393_v47 = vadd.f32 %v392_v44, %v387_v45  ;;  %v389_v38 = vadd.f32 %v388_v31, %v332_v49 }
  0x86   :  { %510 = vrcp.f32 %v393_v47  ;;  %v391_v62 = vadd.f32 %v390_v59, %v389_v38 }
  0x93   :  { %v511_v63 = vpop.eup %510 }
  0x94   :  { %v395_v61 = vmul.f32 %v511_v63, %v391_v62 }
  0x96   :  { %400 = vst.msk [vmem:[#allocation8] sm:$0xf] %vm398_vm6, %v395_v61 }
  0x97   :  { %555 = shalt.err (!%p552_p0)
}
  0x98   :  { %410 = dma.vmem_to_hbm [thread:$0]  %s408_s13, 64, %s987_s3, [#allocation7]  }
  0x99   :  { %568 = dma.done.wait [#allocation7], 64  }
  0x9a   :  { %569 = vsyncadd [#allocation7], 4294967232 }
  0x9b   :  { %414 = vsyncpa [#allocation6], 1 }
  0x9c   :  { %415 = vsyncpa [#allocation7], 1 }

</bundles_post_ra>
